<compile_context>
chip_gen: v7x
topology: tpu7x:2x2x1
jax: 0.10.0
libtpu: 0.0.40
codegen_flags: <defaults>
</compile_context>

<pallas_src>
import functools

import jax
import jax.numpy as jnp
from jax import lax
from jax.experimental import pallas as pl
from jax.experimental.pallas import tpu as pltpu

_LANES = 128
_SUBLANES = 8


def _dice_partial_kernel(yt_ref, yp_ref, inter_ref, union_ref, *,
                         tiles_per_split, row_tile, valid_rows, needs_mask):
    # Grid = (n_split [parallel], tiles_per_split [arbitrary reduction]).
    j = pl.program_id(1)

    @pl.when(j == 0)
    def _():
        inter_ref[...] = jnp.zeros_like(inter_ref)
        union_ref[...] = jnp.zeros_like(union_ref)

    # Widen in-register; inputs stream in native dtype from HBM.
    yt = yt_ref[...].astype(jnp.float32)
    yp = yp_ref[...].astype(jnp.float32)

    def accumulate(yt_v, yp_v):
        # Fold the (rows, 128) tile into (rows/8, 8, 128) and reduce the
        # leading axis only -> (8, 128) vreg-shaped partial (VPU adds only).
        prod = (yt_v * yp_v).reshape(row_tile // _SUBLANES, _SUBLANES, _LANES)
        both = (yt_v + yp_v).reshape(row_tile // _SUBLANES, _SUBLANES, _LANES)
        inter_ref[...] += jnp.sum(prod, axis=0)[None]
        union_ref[...] += jnp.sum(both, axis=0)[None]

    if not needs_mask:
        accumulate(yt, yp)
    else:
        c = pl.program_id(0)
        start = (c * tiles_per_split + j) * row_tile
        is_edge = start + row_tile > valid_rows

        @pl.when(jnp.logical_not(is_edge))
        def _():
            # Fully in-bounds tile: no masking cost.
            accumulate(yt, yp)

        @pl.when(is_edge)
        def _():
            # Boundary (or fully redundant clamped) tile: mask invalid rows.
            row_ids = lax.broadcasted_iota(jnp.int32, (row_tile, _LANES), 0)
            valid = row_ids < (valid_rows - start)
            zero = jnp.float32(0.0)
            accumulate(jnp.where(valid, yt, zero), jnp.where(valid, yp, zero))


def dice_loss(y_true, y_pred, *, smooth=1.0, row_tile=4096, n_split=2):
    """Computes 1 - dice_coefficient, matching the PyTorch DiceLoss.forward."""
    assert y_true.shape == y_pred.shape

    n = int(y_true.size)

    # Minimal layout pad: flat length must be a multiple of 8*128 so the slab
    # is (rows, 128) with rows a multiple of 8.  Only copies when needed.
    chunk = _SUBLANES * _LANES
    n_pad = pl.cdiv(n, chunk) * chunk
    rows = n_pad // _LANES

    # Split the row stream into equal multiple-of-8 chunks (one per core on
    # v7x); drop splits that would have no real rows.
    n_split = max(1, min(int(n_split), rows // _SUBLANES))
    rows_per_split = pl.cdiv(rows // _SUBLANES, n_split) * _SUBLANES

    # Keep the tile a multiple of 8 sublanes and no larger than a split.
    row_tile = max(_SUBLANES, (int(row_tile) // _SUBLANES) * _SUBLANES)
    row_tile = min(row_tile, rows_per_split)
    tiles_per_split = pl.cdiv(rows_per_split, row_tile)

    coverage = n_split * tiles_per_split * row_tile
    needs_mask = coverage != rows           # grid over-covers the row stream
    last_block = (rows - 1) // row_tile     # clamp target for the index_map

    def to_slab(x):
        x = x.reshape(-1)                   # native dtype, no f32 cast
        if n_pad != n:
            x = jnp.pad(x, (0, n_pad - n))  # zeros are neutral for the sums
        return x.reshape(rows, _LANES)

    yt2d = to_slab(y_true)
    yp2d = to_slab(y_pred)

    if needs_mask:
        # Clamp so every block is at worst partially out of bounds; the
        # kernel masks redundant / invalid rows, so clamped tiles contribute 0.
        in_map = lambda c, j: (jnp.minimum(c * tiles_per_split + j, last_block), 0)
    else:
        in_map = lambda c, j: (c * tiles_per_split + j, 0)
    out_map = lambda c, j: (c, 0, 0)

    kernel = functools.partial(
        _dice_partial_kernel,
        tiles_per_split=tiles_per_split,
        row_tile=row_tile,
        valid_rows=rows,
        needs_mask=needs_mask,
    )

    inter_part, union_part = pl.pallas_call(
        kernel,
        out_shape=(
            jax.ShapeDtypeStruct((n_split, _SUBLANES, _LANES), jnp.float32),
            jax.ShapeDtypeStruct((n_split, _SUBLANES, _LANES), jnp.float32),
        ),
        grid_spec=pltpu.PrefetchScalarGridSpec(
            num_scalar_prefetch=0,
            grid=(n_split, tiles_per_split),
            in_specs=[
                pl.BlockSpec((row_tile, _LANES), in_map),
                pl.BlockSpec((row_tile, _LANES), in_map),
            ],
            out_specs=[
                pl.BlockSpec((1, _SUBLANES, _LANES), out_map),
                pl.BlockSpec((1, _SUBLANES, _LANES), out_map),
            ],
        ),
        compiler_params=pltpu.CompilerParams(
            dimension_semantics=("parallel", "arbitrary"),
            vmem_limit_bytes=32 * 1024 * 1024,
        ),
    )(yt2d, yp2d)

    # Tiny final reduce + dice arithmetic on (n_split, 8, 128) partials.
    intersection = jnp.sum(inter_part)
    union = jnp.sum(union_part)
    smooth = jnp.float32(smooth)
    dice = (2.0 * intersection + smooth) / (union + smooth)
    return 1.0 - dice


if __name__ == "__main__":
    key = jax.random.PRNGKey(0)
    k1, k2, k3, k4 = jax.random.split(key, 4)

    # NCHW, consistent with a segmentation loss: batch=2, channels=4, 16x16
    y_true = (jax.random.uniform(k1, (2, 4, 16, 16)) > 0.5).astype(jnp.float32)
    y_pred = jax.random.uniform(k2, (2, 4, 16, 16), dtype=jnp.float32)

    loss = dice_loss(y_true, y_pred, smooth=1.0)
    jax.block_until_ready(loss)

    # pure-JAX reference check
    inter = jnp.sum(y_true * y_pred)
    union = jnp.sum(y_true) + jnp.sum(y_pred)
    ref = 1.0 - (2.0 * inter + 1.0) / (union + 1.0)
    assert jnp.allclose(loss, ref, rtol=1e-5, atol=1e-6), (loss, ref)

    # Second shape that exercises the masked / boundary-tile path
    # (row count not covered exactly by the tile grid).
    y_true2 = (jax.random.uniform(k3, (2, 3, 16, 32)) > 0.5).astype(jnp.float32)
    y_pred2 = jax.random.uniform(k4, (2, 3, 16, 32), dtype=jnp.float32)
    loss2 = dice_loss(y_true2, y_pred2, smooth=1.0)
    jax.block_until_ready(loss2)
    inter2 = jnp.sum(y_true2 * y_pred2)
    union2 = jnp.sum(y_true2) + jnp.sum(y_pred2)
    ref2 = 1.0 - (2.0 * inter2 + 1.0) / (union2 + 1.0)
    assert jnp.allclose(loss2, ref2, rtol=1e-5, atol=1e-6), (loss2, ref2)

    print("KERNEL_OK")
</pallas_src>

<mosaic_0001>
module attributes {stable_mosaic.version = 11 : i64} {
  func.func @_dice_partial_kernel(%arg0: i32, %arg1: i32, %arg2: memref<8x128xf32, #tpu.memory_space<vmem>>, %arg3: memref<8x128xf32, #tpu.memory_space<vmem>>, %arg4: memref<1x8x128xf32, #tpu.memory_space<vmem>>, %arg5: memref<1x8x128xf32, #tpu.memory_space<vmem>>) attributes {dimension_semantics = [#tpu.dimension_semantics<parallel>, #tpu.dimension_semantics<arbitrary>], iteration_bounds = array<i64: 2, 1>, scalar_prefetch = 0 : i64, scratch_operands = 0 : i64, tpu.core_type = #tpu.core_type<tc>, window_params = [{transform_indices = @transform_0, window_bounds = array<i64: 8, 128>}, {transform_indices = @transform_1, window_bounds = array<i64: 8, 128>}, {transform_indices = @transform_2, window_bounds = array<i64: 1, 8, 128>}, {transform_indices = @transform_3, window_bounds = array<i64: 1, 8, 128>}]} {
    %c0_i32 = arith.constant 0 : i32
    %0 = arith.cmpi eq, %arg1, %c0_i32 : i32
    %1 = arith.extui %0 : i1 to i32
    %c0_i32_0 = arith.constant 0 : i32
    %2 = arith.cmpi ne, %1, %c0_i32_0 : i32
    scf.if %2 {
      %cst_17 = arith.constant 0.000000e+00 : f32
      %19 = vector.broadcast %cst_17 : f32 to vector<1x8x128xf32>
      %c0_18 = arith.constant 0 : index
      %c0_19 = arith.constant 0 : index
      %c0_20 = arith.constant 0 : index
      %20 = vector.load %arg4[%c0_18, %c0_19, %c0_20] : memref<1x8x128xf32, #tpu.memory_space<vmem>>, vector<1x8x128xf32>
      tpu.vector_store %arg4[%c0_18, %c0_19, %c0_20], %19 {strides = array<i32>} : memref<1x8x128xf32, #tpu.memory_space<vmem>>, vector<1x8x128xf32>,
      %cst_21 = arith.constant 0.000000e+00 : f32
      %21 = vector.broadcast %cst_21 : f32 to vector<1x8x128xf32>
      %c0_22 = arith.constant 0 : index
      %c0_23 = arith.constant 0 : index
      %c0_24 = arith.constant 0 : index
      %22 = vector.load %arg5[%c0_22, %c0_23, %c0_24] : memref<1x8x128xf32, #tpu.memory_space<vmem>>, vector<1x8x128xf32>
      tpu.vector_store %arg5[%c0_22, %c0_23, %c0_24], %21 {strides = array<i32>} : memref<1x8x128xf32, #tpu.memory_space<vmem>>, vector<1x8x128xf32>,
    } else {
    }
    %c0 = arith.constant 0 : index
    %c0_1 = arith.constant 0 : index
    %3 = vector.load %arg2[%c0, %c0_1] : memref<8x128xf32, #tpu.memory_space<vmem>>, vector<8x128xf32>
    %c0_2 = arith.constant 0 : index
    %c0_3 = arith.constant 0 : index
    %4 = vector.load %arg3[%c0_2, %c0_3] : memref<8x128xf32, #tpu.memory_space<vmem>>, vector<8x128xf32>
    %5 = arith.mulf %3, %4 : vector<8x128xf32>
    %6 = vector.shape_cast %5 : vector<8x128xf32> to vector<1x8x128xf32>
    %7 = arith.addf %3, %4 : vector<8x128xf32>
    %8 = vector.shape_cast %7 : vector<8x128xf32> to vector<1x8x128xf32>
    %c0_4 = arith.constant 0 : index
    %c0_5 = arith.constant 0 : index
    %c0_6 = arith.constant 0 : index
    %9 = vector.load %arg4[%c0_4, %c0_5, %c0_6] : memref<1x8x128xf32, #tpu.memory_space<vmem>>, vector<1x8x128xf32>
    %cst = arith.constant dense<0.000000e+00> : vector<8x128xf32>
    %10 = vector.multi_reduction <add>, %6, %cst [0] : vector<1x8x128xf32> to vector<8x128xf32>
    %11 = vector.shape_cast %10 : vector<8x128xf32> to vector<1x8x128xf32>
    %12 = arith.addf %9, %11 : vector<1x8x128xf32>
    %c0_7 = arith.constant 0 : index
    %c0_8 = arith.constant 0 : index
    %c0_9 = arith.constant 0 : index
    %13 = vector.load %arg4[%c0_7, %c0_8, %c0_9] : memref<1x8x128xf32, #tpu.memory_space<vmem>>, vector<1x8x128xf32>
    tpu.vector_store %arg4[%c0_7, %c0_8, %c0_9], %12 {strides = array<i32>} : memref<1x8x128xf32, #tpu.memory_space<vmem>>, vector<1x8x128xf32>,
    %c0_10 = arith.constant 0 : index
    %c0_11 = arith.constant 0 : index
    %c0_12 = arith.constant 0 : index
    %14 = vector.load %arg5[%c0_10, %c0_11, %c0_12] : memref<1x8x128xf32, #tpu.memory_space<vmem>>, vector<1x8x128xf32>
    %cst_13 = arith.constant dense<0.000000e+00> : vector<8x128xf32>
    %15 = vector.multi_reduction <add>, %8, %cst_13 [0] : vector<1x8x128xf32> to vector<8x128xf32>
    %16 = vector.shape_cast %15 : vector<8x128xf32> to vector<1x8x128xf32>
    %17 = arith.addf %14, %16 : vector<1x8x128xf32>
    %c0_14 = arith.constant 0 : index
    %c0_15 = arith.constant 0 : index
    %c0_16 = arith.constant 0 : index
    %18 = vector.load %arg5[%c0_14, %c0_15, %c0_16] : memref<1x8x128xf32, #tpu.memory_space<vmem>>, vector<1x8x128xf32>
    tpu.vector_store %arg5[%c0_14, %c0_15, %c0_16], %17 {strides = array<i32>} : memref<1x8x128xf32, #tpu.memory_space<vmem>>, vector<1x8x128xf32>,
    return
  }
  func.func @transform_0(%arg0: i32, %arg1: i32) -> (i32, i32) {
    %c1_i32 = arith.constant 1 : i32
    %0 = arith.muli %arg0, %c1_i32 : i32
    %1 = arith.addi %0, %arg1 : i32
    %c0_i32 = arith.constant 0 : i32
    %c0_i32_0 = arith.constant 0 : i32
    return %1, %c0_i32 : i32, i32
  }
  func.func @transform_1(%arg0: i32, %arg1: i32) -> (i32, i32) {
    %c1_i32 = arith.constant 1 : i32
    %0 = arith.muli %arg0, %c1_i32 : i32
    %1 = arith.addi %0, %arg1 : i32
    %c0_i32 = arith.constant 0 : i32
    %c0_i32_0 = arith.constant 0 : i32
    return %1, %c0_i32 : i32, i32
  }
  func.func @transform_2(%arg0: i32, %arg1: i32) -> (i32, i32, i32) {
    %c0_i32 = arith.constant 0 : i32
    %c0_i32_0 = arith.constant 0 : i32
    %c0_i32_1 = arith.constant 0 : i32
    return %arg0, %c0_i32, %c0_i32_0 : i32, i32, i32
  }
  func.func @transform_3(%arg0: i32, %arg1: i32) -> (i32, i32, i32) {
    %c0_i32 = arith.constant 0 : i32
    %c0_i32_0 = arith.constant 0 : i32
    %c0_i32_1 = arith.constant 0 : i32
    return %arg0, %c0_i32, %c0_i32_0 : i32, i32, i32
  }
}

</mosaic_0001>

<bundles_post_ra>
// kernel: tpu_custom_call.1
= control target key start
LH: loop header
LB: loop body
LE: loop exit
PB: predicated region body
PF: predicated region fallthrough
CT: control target
= control target key end

     0   :  { %9 = vsyncpa [#allocation3], 0  ;;  %s984_s0 = inlined_call_operand.hbm [shape: f32[16,128], index: 0, kind: input, shape index: {}]   ;;  %s985_s1 = inlined_call_operand.hbm [shape: f32[16,128], index: 1, kind: input, shape index: {}]   ;;  %s986_s2 = inlined_call_operand.hbm [shape: f32[2,8,128], index: 2, kind: output, shape index: {0}]   ;;  %s987_s3 = inlined_call_operand.hbm [shape: f32[2,8,128], index: 3, kind: output, shape index: {1}]  }
   0x1   :  { %11 = vsyncpa [#allocation3 + $0x1], 0 }
   0x2   :  { %12 = vsyncpa [#allocation6], 0 }
   0x3   :  { %14 = vsyncpa [#allocation6 + $0x1], 0 }
   0x4   :  { %15 = vsyncpa [#allocation4], 0 }
   0x5   :  { %17 = vsyncpa [#allocation4 + $0x1], 0 }
   0x6   :  { %18 = vsyncpa [#allocation9], 0 }
   0x7   :  { %20 = vsyncpa [#allocation9 + $0x1], 0  ;;  %s735_s12 = smov 0   ;;  %s737_s13 = smov 0  }
   0x8   :  { %s739_s14 = smov 0   ;;  %s741_s15 = smov 0  }
   0x9   :  { %s743_s16 = smov 0   ;;  %s745_s17 = smov 0  }
   0xa LB: > { %s439_s18 = sadd.s32 4294967295, %s709_s17   ;;  %s440_s19 = sadd.s32 4294967294, %s709_s17   ;;  %s709_s17 = sphi %s745_s17, %s26_s17   ;;  %s705_s16 = sphi %s743_s16, %s1007_s16   ;;  %s701_s15 = sphi %s741_s15, %s1006_s15   ;;  %s697_s14 = sphi %s739_s14, %s1005_s14   ;;  %s693_s13 = sphi %s737_s13, %s1004_s13   ;;  %s689_s12 = sphi %s735_s12, %s1003_s12  }
   0xb   : > { %s38_s20 = sadd.s32 1, %s705_s16  ;;  %s47_s21 = sadd.s32 1, %s697_s14 }
   0xc   : > { %p40_p0 = scmp.ge.s32.totalorder %s38_s20, 2  ;;  %p54_p1 = scmp.ne.s32.totalorder %s697_s14, %s693_s13 }
   0xd   : > { %p55_p2 = scmp.eq.s32.totalorder %s709_s17, 0  ;;  %p60_p3 = scmp.ne.s32.totalorder %s693_s13, %s689_s12 }
   0xe   : > { %s1009_s20 = smov (%p40_p0, %s38_s20), 0  ;;  %p61_p5 = scmp.eq.s32.totalorder %s439_s18, 0 }
   0xf   : > { %p776_p4 = por %p55_p2, %p54_p1  ;;  %s44_s23 = ssub.s32 %s705_s16, %s1009_s20 }
  0x10   : > { %p112_p6 = scmp.eq.s32.totalorder %s439_s18, 1  ;;  %p45_p7 = scmp.eq.s32.totalorder %s44_s23, 0 }
  0x11   : > { %p782_p8 = por %p61_p5, %p60_p3  ;;  %p118_p10 = scmp.eq.s32.totalorder %s440_s19, 1 }
  0x12   : > { %p786_p9 = por %p112_p6, %p54_p1  ;;  %p480_p13 = scmp.lt.s32.totalorder %s709_s17, 2 }
  0x13   : > { %s991_s24 = scalar_select %p782_p8, 1, 0 }
  0x14   : > { %s992_s25 = scalar_select %p786_p9, 1, 0 }
  0x15   : > { %s791_s26 = scalar_select %p45_p7, %s697_s14, %s47_s21  }
  0x16   : > { %p793_p11 = por %p118_p10, %p60_p3  ;;  %s800_s28 = sand.u32 1, %s697_s14  }
  0x17   : > { %s443_s29 = sshll.u32 %s800_s28, 3  ;;  %s444_s30 = sshll.u32 %s705_s16, 7 }
  0x18   : > { %s993_s27 = scalar_select %p793_p11, 1, 0 }
  0x19   : > { %s809_s6 = scalar_lea.hbm %s984_s0, %s444_s30  ;;  %s168_s7 = scalar_lea.vmem [#allocation2], %s443_s29 }
  0x1a   : > { %s176_s8 = sshll.u32 %s168_s7, 4  ;;  %p817_p0 = pnand %p480_p13, %p776_p4  ;;  %s813_s8 = int_to_ptr.vmem [resolvable:$true] %s176_s8 }
  0x1b   : > { %s165_s10 = scalar_lea.sflag [#allocation3], %s800_s28  ;;  %s531_s11 = scalar_lea.hbm %s809_s6, 128 }
  0x1c   : > { %p532_p3 = scmp.ne.s32.totalorder %s809_s6, %s531_s11  ;;  %p533_p5 = pneg %p817_p0 }
  0x1d   : > { %s536_s21 = scalar_lea.hbm %s984_s0, 256  ;;  %p537_p4 = scmp.lt.u32.totalorder %s809_s6, %s984_s0 }
  0x1e   : > { %p534_p6 = pnand %p533_p5, %p532_p3  ;;  %p538_p10 = scmp.lt.u32.totalorder %s536_s21, %s531_s11 }
  0x1f   : > { %p540_p12 = scmp.lt.u32.totalorder %s531_s11, %s809_s6 }
  0x20   : > { %p535_p7 = pneg %p534_p6  ;;  %p539_p13 = por %p538_p10, %p537_p4 }
  0x22   : > { %p541_p1 = por %p540_p12, %p539_p13 }
  0x24   : > { %p542_p2 = pnand %p541_p1, %p535_p7 }
  0x26   : > { %545 = shalt.err (!%p542_p2)
}
  0x27   : > { %s546_s4 = scalar_lea.vmem %s813_s8, 128  ;;  %s711_s5 = smov [#allocation2]  }
  0x28   : > { %p547_p3 = scmp.ne.s32.totalorder %s813_s8, %s546_s4  ;;  %s551_s7 = sshll.u32 %s711_s5, 4  ;;  %s552_s7 = int_to_ptr.vmem [resolvable:$false] %s551_s7 }
  0x29   : > { %s553_s18 = scalar_lea.vmem %s552_s7, 256  ;;  %p554_p9 = scmp.lt.s32.totalorder %s813_s8, %s552_s7 }
  0x2a   : > { %p549_p6 = pnand %p547_p3, %p533_p5  ;;  %p555_p4 = scmp.lt.s32.totalorder %s553_s18, %s546_s4 }
  0x2c   : > { %p550_p11 = pneg %p549_p6  ;;  %p556_p10 = por %p555_p4, %p554_p9 }
  0x2e   : > { %p557_p12 = pnand %p556_p10, %p550_p11 }
  0x30   : > { %560 = shalt.err (!%p557_p12)
}
  0x31   : > { %469 = dma.hbm_to_vmem [thread:$0]  (!%p817_p0), %s809_s6, 128, %s813_s8, %s165_s10  }
  0x32   : > { %p995_p1 = scmp.lt.s32.totalorder %s709_s17, 3  ;;  %p996_p2 = scmp.ge.s32.totalorder %s709_s17, 1 }
  0x33   : > { %s862_s22 = scalar_lea.hbm %s985_s1, %s444_s30  ;;  %s187_s23 = scalar_lea.vmem [#allocation5], %s443_s29 }
  0x34   : > { %p853_p7 = pnand %p996_p2, %p995_p1  ;;  %s195_s4 = sshll.u32 %s187_s23, 4  ;;  %s196_s4 = int_to_ptr.vmem [resolvable:$true] %s195_s4 }
  0x35   : > { %s184_s6 = scalar_lea.sflag [#allocation6], %s800_s28  ;;  %s561_s8 = scalar_lea.hbm %s862_s22, 128 }
  0x36   : > { %s997_s11 = scalar_select %p853_p7, 1, 0 }
  0x37   : > { %p562_p9 = scmp.ne.s32.totalorder %s862_s22, %s561_s8  ;;  %s566_s30 = scalar_lea.hbm %s985_s1, 256 }
  0x38   : > { %p567_p3 = scmp.lt.u32.totalorder %s862_s22, %s985_s1  ;;  %p568_p6 = scmp.lt.u32.totalorder %s566_s30, %s561_s8 }
  0x39   : > { %p564_p11 = pnand %p562_p9, %p533_p5  ;;  %p570_p10 = scmp.lt.u32.totalorder %s561_s8, %s862_s22 }
  0x3a   : > { %p569_p4 = por %p568_p6, %p567_p3 }
  0x3b   : > { %p565_p13 = pneg %p564_p11 }
  0x3c   : > { %p571_p12 = por %p570_p10, %p569_p4 }
  0x3e   : > { %p572_p1 = pnand %p571_p12, %p565_p13 }
  0x40   : > { %575 = shalt.err (!%p572_p1)
}
  0x41   : > { %s576_s28 = scalar_lea.vmem %s196_s4, 128  ;;  %s712_s29 = smov [#allocation5]  }
  0x42   : > { %p577_p2 = scmp.ne.s32.totalorder %s196_s4, %s576_s28  ;;  %s581_s19 = sshll.u32 %s712_s29, 4  ;;  %s582_s19 = int_to_ptr.vmem [resolvable:$false] %s581_s19 }
  0x43   : > { %s583_s21 = scalar_lea.vmem %s582_s19, 256  ;;  %p584_p8 = scmp.lt.s32.totalorder %s196_s4, %s582_s19 }
  0x44   : > { %p579_p9 = pnand %p577_p2, %p533_p5  ;;  %p585_p7 = scmp.lt.s32.totalorder %s583_s21, %s576_s28 }
  0x46   : > { %p580_p11 = pneg %p579_p9  ;;  %p586_p3 = por %p585_p7, %p584_p8 }
  0x48   : > { %p587_p6 = pnand %p586_p3, %p580_p11 }
  0x4a   : > { %590 = shalt.err (!%p587_p6)
}
  0x4b   : > { %472 = dma.hbm_to_vmem [thread:$0]  (!%p817_p0), %s862_s22, 128, %s196_s4, %s184_s6  }
  0x4c   : > { %p998_p13 = scmp.ne.s32.totalorder %s997_s11, 0 }
  0x4d   : > { %s889_s23 = sand.u32 (!%p998_p13), 1, %s693_s13   ;;  %p999_p5 = scmp.ne.s32.totalorder (!%p998_p13), %s991_s24, 0 }
  0x4e   : > { %204 = sbr.rel (%p998_p13) target bundleno = 138 (0x8a), region = 28  ;;  %s448_s8 = sshll.u32 (!%p998_p13), %s889_s23, 3 }
  0x4f   : > { %s207_s10 = scalar_lea.sflag (!%p998_p13), [#allocation3], %s889_s23  ;;  %s210_s5 = scalar_lea.vmem (!%p998_p13), [#allocation2], %s448_s8 }
  0x55   : > { %672 = dma.done.wait (%p999_p5), %s207_s10, 128  }
  0x56   : > { %674 = vsyncadd (%p999_p5), %s207_s10, 4294967168  ;;  %s216_s9 = scalar_lea.sflag [#allocation6], %s889_s23  ;;  %s219_s22 = scalar_lea.vmem [#allocation5], %s448_s8 }
  0x57   : > { %676 = dma.done.wait (%p999_p5), %s216_s9, 128  }
  0x58   : > { %678 = vsyncadd (%p999_p5), %s216_s9, 4294967168  ;;  %s454_s11 = sshll.u32 %s701_s15, 7  ;;  %v260_v0 = vld [vmem:[%s210_s5] sm:$0xff]  ;;  %v261_v1 = vld [vmem:[%s219_s22] sm:$0xff]  ;;  %s244_s4 = scalar_lea.vmem [#allocation7], %s448_s8 }
  0x59   : > { %s291_s6 = sshll.u32 %s244_s4, 4  ;;  %v262_v2 = vmul.f32 %v261_v1, %v260_v0  ;;  %v263_v3 = vadd.f32 %v261_v1, %v260_v0  ;;  %s251_s30 = scalar_lea.vmem [#allocation8], %s448_s8  ;;  %s908_s6 = int_to_ptr.vmem [resolvable:$true] %s291_s6 }
  0x5a   : > { %s304_s7 = sshll.u32 %s251_s30, 4  ;;  %s906_s29 = scalar_lea.hbm %s986_s2, %s454_s11  ;;  %s915_s7 = int_to_ptr.vmem [resolvable:$true] %s304_s7 }
  0x5b   : > { %s913_s15 = scalar_lea.hbm %s987_s3, %s454_s11  ;;  %267 = vst [vmem:[%s244_s4] sm:$0xff] %v262_v2  ;;  %271 = vst [vmem:[%s251_s30] sm:$0xff] %v263_v3  ;;  %s273_s21 = scalar_lea.sflag [#allocation4], %s889_s23 }
  0x5c   : > { %s591_s8 = scalar_lea.vmem %s908_s6, 128  ;;  %p1000_p0 = scmp.ne.s32.totalorder %s992_s25, 0 }
  0x5d   : > { %p592_p8 = scmp.ne.s32.totalorder %s908_s6, %s591_s8  ;;  %s713_s10 = smov [#allocation7]  }
  0x5e   : > { %s595_s5 = sshll.u32 %s713_s10, 4  ;;  %s596_s5 = int_to_ptr.vmem [resolvable:$false] %s595_s5 }
  0x5f   : > { %p593_p7 = pnand %p592_p8, %p1000_p0  ;;  %s597_s9 = scalar_lea.vmem %s596_s5, 256 }
  0x60   : > { %p598_p10 = scmp.lt.s32.totalorder %s908_s6, %s596_s5  ;;  %p599_p12 = scmp.lt.s32.totalorder %s597_s9, %s591_s8 }
  0x61   : > { %p594_p4 = pneg %p593_p7 }
  0x62   : > { %p600_p1 = por %p599_p12, %p598_p10 }
  0x64   : > { %p601_p2 = pnand %p600_p1, %p594_p4 }
  0x66   : > { %604 = shalt.err (!%p601_p2)
}
  0x67   : > { %s605_s22 = scalar_lea.hbm %s906_s29, 128  ;;  %s609_s30 = scalar_lea.hbm %s986_s2, 256 }
  0x68   : > { %p606_p9 = scmp.ne.s32.totalorder %s906_s29, %s605_s22  ;;  %p610_p6 = scmp.lt.u32.totalorder %s906_s29, %s986_s2 }
  0x69   : > { %p611_p13 = scmp.lt.u32.totalorder %s609_s30, %s605_s22  ;;  %p613_p8 = scmp.lt.u32.totalorder %s605_s22, %s906_s29 }
  0x6a   : > { %p607_p11 = pnand %p606_p9, %p1000_p0 }
  0x6b   : > { %p612_p5 = por %p611_p13, %p610_p6 }
  0x6c   : > { %p608_p3 = pneg %p607_p11 }
  0x6d   : > { %p614_p7 = por %p613_p8, %p612_p5 }
  0x6f   : > { %p615_p4 = pnand %p614_p7, %p608_p3 }
  0x71   : > { %618 = shalt.err (!%p615_p4)
}
  0x72   : > { %462 = dma.vmem_to_hbm [thread:$0]  (%p1000_p0), %s908_s6, 128, %s906_s29, %s273_s21  }
  0x73   : > { %s278_s24 = scalar_lea.sflag [#allocation9], %s889_s23  ;;  %s619_s19 = scalar_lea.vmem %s915_s7, 128 }
  0x74   : > { %p620_p10 = scmp.ne.s32.totalorder %s915_s7, %s619_s19  ;;  %s714_s8 = smov [#allocation8]  }
  0x75   : > { %s623_s10 = sshll.u32 %s714_s8, 4  ;;  %s624_s10 = int_to_ptr.vmem [resolvable:$false] %s623_s10 }
  0x76   : > { %p621_p12 = pnand %p620_p10, %p1000_p0  ;;  %s625_s5 = scalar_lea.vmem %s624_s10, 256 }
  0x77   : > { %p626_p2 = scmp.lt.s32.totalorder %s915_s7, %s624_s10  ;;  %p627_p9 = scmp.lt.s32.totalorder %s625_s5, %s619_s19 }
  0x78   : > { %p622_p1 = pneg %p621_p12 }
  0x79   : > { %p628_p11 = por %p627_p9, %p626_p2 }
  0x7b   : > { %p629_p3 = pnand %p628_p11, %p622_p1 }
  0x7d   : > { %632 = shalt.err (!%p629_p3)
}
  0x7e   : > { %s633_s23 = scalar_lea.hbm %s913_s15, 128  ;;  %s637_s21 = scalar_lea.hbm %s987_s3, 256 }
  0x7f   : > { %p634_p6 = scmp.ne.s32.totalorder %s913_s15, %s633_s23  ;;  %p638_p8 = scmp.lt.u32.totalorder %s913_s15, %s987_s3 }
  0x80   : > { %p639_p7 = scmp.lt.u32.totalorder %s637_s21, %s633_s23  ;;  %p641_p10 = scmp.lt.u32.totalorder %s633_s23, %s913_s15 }
  0x81   : > { %p635_p13 = pnand %p634_p6, %p1000_p0 }
  0x82   : > { %p640_p4 = por %p639_p7, %p638_p8 }
  0x83   : > { %p636_p5 = pneg %p635_p13 }
  0x84   : > { %p642_p12 = por %p641_p10, %p640_p4 }
  0x86   : > { %p643_p1 = pnand %p642_p12, %p636_p5 }
  0x88   : > { %646 = shalt.err (!%p643_p1)
}
  0x89   : > { %463 = dma.vmem_to_hbm [thread:$0]  (%p1000_p0), %s915_s7, 128, %s913_s15, %s278_s24  }
  0x8a PF: > { %s316_s11 = sand.u32 1, %s689_s12   ;;  %p1001_p2 = scmp.ne.s32.totalorder %s993_s27, 0 }
  0x8b   : > { %p1002_p9 = scmp.ge.s32.totalorder %s709_s17, 2  ;;  %s317_s4 = scalar_lea.sflag [#allocation4], %s316_s11 }
  0x8d   : > { %p474_p11 = pnand %p1002_p9, %p1001_p2 }
  0x8f   : > { %680 = dma.done.wait (!%p474_p11), %s317_s4, 128  }
  0x90   : > { %682 = vsyncadd (!%p474_p11), %s317_s4, 4294967168  ;;  %s326_s30 = scalar_lea.sflag [#allocation9], %s316_s11 }
  0x91   : > { %684 = dma.done.wait (!%p474_p11), %s326_s30, 128  }
  0x92   : > { %686 = vsyncadd (!%p474_p11), %s326_s30, 4294967168  ;;  %s26_s17 = sadd.s32 1, %s709_s17   ;;  %s1003_s12 = smov %s693_s13 }
  0x93   : > { %p23_p3 = scmp.ge.s32.totalorder %s26_s17, 4   ;;  %s1004_s13 = smov %s697_s14 }
  0x94   : > { %s1005_s14 = smov %s791_s26  ;;  %s1006_s15 = smov %s705_s16 }
  0x95   : > { %s1007_s16 = smov %s1009_s20  ;;  %25 = sbr.rel (!%p23_p3) target bundleno = 10 (0xa), region = 107 }
  0x9c   :  { %331 = vsyncpa [#allocation3], 1 }
  0x9d   :  { %333 = vsyncpa [#allocation3 + $0x1], 1 }
  0x9e   :  { %334 = vsyncpa [#allocation6], 1 }
  0x9f   :  { %336 = vsyncpa [#allocation6 + $0x1], 1 }
  0xa0   :  { %337 = vsyncpa [#allocation4], 1 }
  0xa1   :  { %339 = vsyncpa [#allocation4 + $0x1], 1 }
  0xa2   :  { %340 = vsyncpa [#allocation9], 1 }
  0xa3   :  { %342 = vsyncpa [#allocation9 + $0x1], 1 }

</bundles_post_ra>
